<compile_context>
chip_gen: v5e
topology: v5e:2x2
jax: 0.10.0
libtpu: 0.0.40
codegen_flags: <defaults>
</compile_context>

<pallas_src>
import numpy as np
import jax
import jax.numpy as jnp
from jax import lax
from jax.experimental import pallas as pl
from jax.experimental.pallas import tpu as pltpu

BN_EPS = 1e-5
LANE = 128
SUBLANE = 8


def _round_up(x, m):
    return ((x + m - 1) // m) * m


# ----------------------------------------------------------------------------
# Fused kernel factory.
#
# Operand order (whole-array VMEM blocks, no grid at toy shape):
#   x_slab                 (C0p, G0)         input slab, halo/pad lanes zero
#   w_all                  (sum Coutp, Wc)   all conv weights, packed, mxu dtype
#   mask[j]                (1, G)            valid-lane masks (one per length)
#   mat[m]                 (Gin, Gout)       selection / pool matrices, mxu dtype
#   out[b]                 (Rb, Gb)          per-branch result slab (f32)
# ----------------------------------------------------------------------------
def _build_fused_kernel(plan, n_masks, n_mats, mxu_dtype):
    def kernel(*refs):
        x_ref, w_ref = refs[0], refs[1]
        mask_refs = refs[2:2 + n_masks]
        mat_refs = refs[2 + n_masks:2 + n_masks + n_mats]
        out_refs = refs[2 + n_masks + n_mats:]

        w_all = w_ref[...]
        masks = [m[...] for m in mask_refs]
        mats = [m[...] for m in mat_refs]
        x0 = x_ref[...]                                    # (C0p, G0), f32

        for bi, bplan in enumerate(plan):
            xb = x0                                        # each branch restarts from x
            for lp in bplan:
                k, pad = lp["k"], lp["pad"]
                rpad, coutp = lp["rpad_in"], lp["coutp"]
                g_in = lp["g_in"]
                mask = masks[lp["mask_idx"]]               # (1, g_out)

                # conv weight tile: static slice of the packed weight slab
                w2 = w_all[lp["w_row"]:lp["w_row"] + coutp, :k * rpad]

                # --- im2col: K static lane rolls of the halo-padded slab (XLU),
                #     sublane-aligned taps concat ---------------------------------
                taps = [xb if dk == pad
                        else pltpu.roll(xb, shift=(pad - dk) % g_in, axis=1)
                        for dk in range(k)]
                xcol = jnp.concatenate(taps, axis=0) if k > 1 else taps[0]

                # --- Conv1d(bias=False): one 2-D MXU matmul, batch folded in lanes
                y = jnp.dot(w2, xcol.astype(mxu_dtype),
                            preferred_element_type=jnp.float32)

                if lp["fast"]:                             # stride 1, l_out == l_in
                    ym = y * mask                          # zero halo lanes for stats
                    xp = xb                                # adaptive pool == identity
                else:
                    # stride>1 / even-k: output-column selection + adaptive-avg-pool
                    # skip, both as MXU matmuls against block-diagonal matrices.
                    sel = mats[lp["sel_idx"]]              # (g_in, g_out)
                    y = jnp.dot(y.astype(mxu_dtype), sel,
                                preferred_element_type=jnp.float32)
                    ym = y                                 # sel zeroes non-valid lanes
                    pm = mats[lp["pool_idx"]]              # (g_in, g_out)
                    xp = jnp.dot(xb.astype(mxu_dtype), pm,
                                 preferred_element_type=jnp.float32)

                # --- BatchNorm1d train-mode batch stats (f32) + ReLU --------------
                inv_m = 1.0 / float(lp["n_valid"])
                s = jnp.sum(ym, axis=1, keepdims=True)
                ss = jnp.sum(ym * ym, axis=1, keepdims=True)
                mean = s * inv_m
                var = ss * inv_m - mean * mean             # biased variance
                scale = lax.rsqrt(var + BN_EPS)            # gamma=1, beta=0
                y = jnp.maximum((y - mean) * scale, 0.0) * mask   # keep halos zero

                # --- torch.cat([x_pooled, y], 1): sublane-aligned row blocks ------
                xb = jnp.concatenate([xp, y], axis=0)

            out_refs[bi][...] = xb                         # (R_branch, G_branch)

    return kernel


# ----------------------------------------------------------------------------
# Plain-JAX / numpy glue (layout plumbing, static plan construction)
# ----------------------------------------------------------------------------
def adaptive_pool_weights(l_in, l_out):
    """Exact F.adaptive_avg_pool1d(l_in -> l_out) as an (l_in, l_out) matrix."""
    pm = np.zeros((l_in, l_out), dtype=np.float32)
    for j in range(l_out):
        start = (j * l_in) // l_out
        end = -((-(j + 1) * l_in) // l_out)                # ceil((j+1)*l_in/l_out)
        pm[start:end, j] = 1.0 / (end - start)
    return pm


def init_multibranch_params(key, kernel, channel):
    """Conv weights ~ N(0, 0.1) per nn.init.normal_(w, 0, 0.1); BN gamma=1, beta=0."""
    params = []
    for bi in range(len(kernel)):
        layer_ws, in_ch = [], 0
        for li in range(len(kernel[bi])):
            in_ch += channel[bi][li]
            out_ch = channel[bi][li + 1]
            k = kernel[bi][li]
            key, sub = jax.random.split(key)
            layer_ws.append(0.1 * jax.random.normal(sub, (out_ch, in_ch, k),
                                                    dtype=jnp.float32))
        params.append(layer_ws)
    return params


def multibranch_forward(x, params, kernels, strides, *, mxu_dtype=jnp.bfloat16):
    x = jnp.asarray(x, jnp.float32)
    n, c0, l0 = x.shape

    # Global halo: covers every tap offset dk - pad in [-pad, k-1-pad] of every
    # layer of every branch, so one shared slab layout serves all branches.
    halo = 0
    for bk in kernels:
        for k in bk:
            p = (k - 1) // 2
            halo = max(halo, p, k - 1 - p)

    def layout(l):
        lp = l + 2 * halo
        return lp, _round_up(n * lp, LANE)

    lp0, g0 = layout(l0)
    c0p = _round_up(c0, SUBLANE)

    # Input slab (C0p, G0): sample b's data at lanes [b*lp0+halo, b*lp0+halo+l0);
    # halo lanes / pad-to-128 lanes / padded channel rows are zero.
    xt = jnp.pad(jnp.transpose(x, (1, 0, 2)),
                 ((0, c0p - c0), (0, 0), (halo, halo)))
    x_slab = jnp.pad(xt.reshape(c0p, n * lp0), ((0, 0), (0, g0 - n * lp0)))

    # ---- static plan + packed weights / masks / matrices (trace-time numpy) ----
    plan, branch_info = [], []
    w_blocks, masks, mats = [], [], []
    mask_cache, w_row = {}, 0

    for bi, layer_ws in enumerate(params):
        row_map = list(range(c0))                          # real channel -> slab row
        rpad = c0p
        l_in, lp_in, g_in = l0, lp0, g0
        bplan = []
        for li, w in enumerate(layer_ws):
            w = np.asarray(w, np.float32)
            cout, cin, k = w.shape
            assert cin == len(row_map)
            s = strides[bi][li]
            pad = (k - 1) // 2
            l_out = (l_in + 2 * pad - k) // s + 1
            lp_out, g_out = layout(l_out)
            coutp = _round_up(cout, SUBLANE)
            fast = (s == 1 and l_out == l_in)

            # taps-major packed weight: w2p[o, dk*rpad + row_map[c]] = W[o, c, dk]
            w2p = np.zeros((coutp, k * rpad), np.float32)
            rm = np.asarray(row_map)
            for dk in range(k):
                w2p[:cout, dk * rpad + rm] = w[:, :, dk]
            w_blocks.append(w2p)

            if l_out not in mask_cache:
                m = np.zeros((1, g_out), np.float32)
                for b in range(n):
                    m[0, b * lp_out + halo: b * lp_out + halo + l_out] = 1.0
                mask_cache[l_out] = len(masks)
                masks.append(m)

            sel_idx = pool_idx = None
            if not fast:
                sel = np.zeros((g_in, g_out), np.float32)
                pm = np.zeros((g_in, g_out), np.float32)
                pw = adaptive_pool_weights(l_in, l_out)
                for b in range(n):
                    for j in range(l_out):
                        sel[b * lp_in + halo + j * s, b * lp_out + halo + j] = 1.0
                    pm[b * lp_in + halo: b * lp_in + halo + l_in,
                       b * lp_out + halo: b * lp_out + halo + l_out] = pw
                sel_idx = len(mats); mats.append(sel)
                pool_idx = len(mats); mats.append(pm)

            bplan.append(dict(k=k, pad=pad, fast=fast, rpad_in=rpad, coutp=coutp,
                              g_in=g_in, w_row=w_row, mask_idx=mask_cache[l_out],
                              sel_idx=sel_idx, pool_idx=pool_idx,
                              n_valid=n * l_out))

            row_map = row_map + [rpad + o for o in range(cout)]
            rpad += coutp
            w_row += coutp
            l_in, lp_in, g_in = l_out, lp_out, g_out

        plan.append(bplan)
        branch_info.append(dict(row_map=row_map, rpad=rpad, l=l_in, lp=lp_in, g=g_in))

    # Pack all conv weights into ONE sublane/lane-padded operand (single DMA).
    w_rows = sum(b.shape[0] for b in w_blocks)
    w_cols = _round_up(max(b.shape[1] for b in w_blocks), LANE)
    w_all = np.zeros((w_rows, w_cols), np.float32)
    r = 0
    for b in w_blocks:
        w_all[r:r + b.shape[0], :b.shape[1]] = b
        r += b.shape[0]

    operands = [x_slab,
                jnp.asarray(w_all, dtype=mxu_dtype),
                *[jnp.asarray(m) for m in masks],
                *[jnp.asarray(m, dtype=mxu_dtype) for m in mats]]

    out_shapes = tuple(jax.ShapeDtypeStruct((b_["rpad"], b_["g"]), jnp.float32)
                       for b_ in branch_info)

    vmem = pl.BlockSpec(memory_space=pltpu.MemorySpace.VMEM)
    outs = pl.pallas_call(
        _build_fused_kernel(plan, len(masks), len(mats), mxu_dtype),
        out_shape=out_shapes,
        in_specs=[vmem] * len(operands),
        out_specs=tuple(vmem for _ in out_shapes),
    )(*operands)

    # Slab -> NCL per branch (drop padded channel rows / halo lanes), then the
    # final torch.cat(dim=1) over branches.
    pieces = []
    for b_, ob in zip(branch_info, outs):
        rows = jnp.asarray(np.asarray(b_["row_map"], np.int32))
        cb, lb, lpb = len(b_["row_map"]), b_["l"], b_["lp"]
        sl = ob[rows][:, :n * lpb].reshape(cb, n, lpb)[:, :, halo:halo + lb]
        pieces.append(jnp.transpose(sl, (1, 0, 2)))
    return jnp.concatenate(pieces, axis=1)


# ----------------------------------------------------------------------------
# Pure-JAX reference (independent im2col/einsum formulation) for correctness
# ----------------------------------------------------------------------------
def reference_forward(x, params, kernels, strides):
    hi = lax.Precision.HIGHEST

    def layer(xb, w, k, s):
        n, c, l = xb.shape
        pad = (k - 1) // 2
        l_out = (l + 2 * pad - k) // s + 1
        xpad = jnp.pad(xb, ((0, 0), (0, 0), (pad, pad)))
        cols = [lax.slice(xpad, (0, 0, dk),
                          (n, c, dk + (l_out - 1) * s + 1), (1, 1, s))
                for dk in range(k)]
        xcol = jnp.stack(cols, axis=2).reshape(n, c * k, l_out)
        y = jnp.einsum("oc,ncl->nol", w.reshape(w.shape[0], -1), xcol, precision=hi)
        mean = jnp.mean(y, axis=(0, 2), keepdims=True)
        var = jnp.mean((y - mean) ** 2, axis=(0, 2), keepdims=True)
        y = jnp.maximum((y - mean) * lax.rsqrt(var + BN_EPS), 0.0)
        xp = jnp.einsum("ncl,lm->ncm", xb,
                        jnp.asarray(adaptive_pool_weights(l, l_out)), precision=hi)
        return jnp.concatenate([xp, y], axis=1)

    outs = []
    for bi in range(len(kernels)):
        xb = x
        for li in range(len(kernels[bi])):
            xb = layer(xb, params[bi][li], kernels[bi][li], strides[bi][li])
        outs.append(xb)
    return jnp.concatenate(outs, axis=1)


if __name__ == "__main__":
    # MultiBranchNet(kernel, channel, stride):
    #   branch 0: kernels [3, 5], channels [4, 8, 8],  strides [1, 1]
    #   branch 1: kernels [3],    channels [4, 16],    strides [1]
    kernel_cfg = [[3, 5], [3]]
    channel_cfg = [[4, 8, 8], [4, 16]]
    stride_cfg = [[1, 1], [1]]

    N, C0, L = 2, 4, 16
    key = jax.random.PRNGKey(0)
    key, kx = jax.random.split(key)
    x = jax.random.normal(kx, (N, C0, L), dtype=jnp.float32)
    params = init_multibranch_params(key, kernel_cfg, channel_cfg)

    ref = jax.block_until_ready(reference_forward(x, params, kernel_cfg, stride_cfg))

    # (1) f32 MXU operands: strict structural/numerical check of the fusion.
    out = jax.block_until_ready(
        multibranch_forward(x, params, kernel_cfg, stride_cfg, mxu_dtype=jnp.float32))
    assert out.shape == (N, 40, L), out.shape
    np.testing.assert_allclose(np.asarray(out), np.asarray(ref), rtol=2e-3, atol=2e-3)

    # (2) bf16 MXU operands (production path; f32 accumulation & BN stats) --
    #     loose tolerance only reflects bf16 input rounding, exactness is
    #     already established by (1).
    out_bf = jax.block_until_ready(
        multibranch_forward(x, params, kernel_cfg, stride_cfg, mxu_dtype=jnp.bfloat16))
    np.testing.assert_allclose(np.asarray(out_bf), np.asarray(ref), rtol=1e-1, atol=1e-1)

    # (3) stride-2 config: exercises the selection / adaptive-pool-matrix path
    #     that the review flagged as untested.
    k2, c2, s2 = [[3]], [[4, 8]], [[2]]
    params2 = init_multibranch_params(jax.random.PRNGKey(1), k2, c2)
    out2 = jax.block_until_ready(
        multibranch_forward(x, params2, k2, s2, mxu_dtype=jnp.float32))
    ref2 = jax.block_until_ready(reference_forward(x, params2, k2, s2))
    assert out2.shape == (N, 12, 8), out2.shape
    np.testing.assert_allclose(np.asarray(out2), np.asarray(ref2), rtol=2e-3, atol=2e-3)

    print("KERNEL_OK")
</pallas_src>

<mosaic_0001>
module attributes {stable_mosaic.version = 11 : i64} {
  func.func @kernel(%arg0: memref<8x128xf32, #tpu.memory_space<vmem>>, %arg1: memref<32x128xf32, #tpu.memory_space<vmem>>, %arg2: memref<1x128xf32, #tpu.memory_space<vmem>>, %arg3: memref<24x128xf32, #tpu.memory_space<vmem>>, %arg4: memref<24x128xf32, #tpu.memory_space<vmem>>) attributes {dimension_semantics = [], scalar_prefetch = 0 : i64, scratch_operands = 0 : i64, tpu.core_type = #tpu.core_type<tc>} {
    %c0 = arith.constant 0 : index
    %c0_0 = arith.constant 0 : index
    %0 = vector.load %arg1[%c0, %c0_0] : memref<32x128xf32, #tpu.memory_space<vmem>>, vector<32x128xf32>
    %c0_1 = arith.constant 0 : index
    %c0_2 = arith.constant 0 : index
    %1 = vector.load %arg2[%c0_1, %c0_2] : memref<1x128xf32, #tpu.memory_space<vmem>>, vector<1x128xf32>
    %c0_3 = arith.constant 0 : index
    %c0_4 = arith.constant 0 : index
    %2 = vector.load %arg0[%c0_3, %c0_4] : memref<8x128xf32, #tpu.memory_space<vmem>>, vector<8x128xf32>
    %3 = vector.extract_strided_slice %0 {offsets = [0, 0], sizes = [8, 24], strides = [1, 1]} : vector<32x128xf32> to vector<8x24xf32>
    %c1_i32 = arith.constant 1 : i32
    %4 = tpu.dynamic_rotate %2 by %c1_i32 dim 1 : vector<8x128xf32>, i32 -> vector<8x128xf32>
    %c127_i32 = arith.constant 127 : i32
    %5 = tpu.dynamic_rotate %2 by %c127_i32 dim 1 : vector<8x128xf32>, i32 -> vector<8x128xf32>
    %6 = tpu.concatenate %4, %2, %5 in 0 : vector<8x128xf32>, vector<8x128xf32>, vector<8x128xf32> -> vector<24x128xf32>
    %cst = arith.constant dense<0.000000e+00> : vector<8x128xf32>
    %7 = tpu.matmul %3, %6, %cst {dimension_numbers = #tpu.dot_dimension_numbers<[1], [0], [0], [1], [0, 0, 1, 1], [], []>} : vector<8x24xf32>, vector<24x128xf32>, vector<8x128xf32> -> vector<8x128xf32>
    %8 = vector.broadcast %1 : vector<1x128xf32> to vector<8x128xf32>
    %9 = arith.mulf %7, %8 : vector<8x128xf32>
    %cst_5 = arith.constant dense<0.000000e+00> : vector<8xf32>
    %10 = vector.multi_reduction <add>, %9, %cst_5 [1] : vector<8x128xf32> to vector<8xf32>
    %11 = vector.shape_cast %10 : vector<8xf32> to vector<8x1xf32>
    %12 = arith.mulf %9, %9 : vector<8x128xf32>
    %cst_6 = arith.constant dense<0.000000e+00> : vector<8xf32>
    %13 = vector.multi_reduction <add>, %12, %cst_6 [1] : vector<8x128xf32> to vector<8xf32>
    %14 = vector.shape_cast %13 : vector<8xf32> to vector<8x1xf32>
    %cst_7 = arith.constant 3.125000e-02 : f32
    %15 = vector.broadcast %cst_7 : f32 to vector<8x1xf32>
    %16 = arith.mulf %11, %15 : vector<8x1xf32>
    %cst_8 = arith.constant 3.125000e-02 : f32
    %17 = vector.broadcast %cst_8 : f32 to vector<8x1xf32>
    %18 = arith.mulf %14, %17 : vector<8x1xf32>
    %19 = arith.mulf %16, %16 : vector<8x1xf32>
    %20 = arith.subf %18, %19 : vector<8x1xf32>
    %cst_9 = arith.constant 9.99999974E-6 : f32
    %21 = vector.broadcast %cst_9 : f32 to vector<8x1xf32>
    %22 = arith.addf %20, %21 : vector<8x1xf32>
    %23 = math.rsqrt %22 : vector<8x1xf32>
    %24 = vector.broadcast %16 : vector<8x1xf32> to vector<8x128xf32>
    %25 = arith.subf %7, %24 : vector<8x128xf32>
    %26 = vector.broadcast %23 : vector<8x1xf32> to vector<8x128xf32>
    %27 = arith.mulf %25, %26 : vector<8x128xf32>
    %cst_10 = arith.constant 0.000000e+00 : f32
    %28 = vector.broadcast %cst_10 : f32 to vector<8x128xf32>
    %29 = arith.maximumf %27, %28 : vector<8x128xf32>
    %30 = vector.broadcast %1 : vector<1x128xf32> to vector<8x128xf32>
    %31 = arith.mulf %29, %30 : vector<8x128xf32>
    %32 = tpu.concatenate %2, %31 in 0 : vector<8x128xf32>, vector<8x128xf32> -> vector<16x128xf32>
    %33 = vector.extract_strided_slice %0 {offsets = [8, 0], sizes = [8, 80], strides = [1, 1]} : vector<32x128xf32> to vector<8x80xf32>
    %c2_i32 = arith.constant 2 : i32
    %34 = tpu.dynamic_rotate %32 by %c2_i32 dim 1 : vector<16x128xf32>, i32 -> vector<16x128xf32>
    %c1_i32_11 = arith.constant 1 : i32
    %35 = tpu.dynamic_rotate %32 by %c1_i32_11 dim 1 : vector<16x128xf32>, i32 -> vector<16x128xf32>
    %c127_i32_12 = arith.constant 127 : i32
    %36 = tpu.dynamic_rotate %32 by %c127_i32_12 dim 1 : vector<16x128xf32>, i32 -> vector<16x128xf32>
    %c126_i32 = arith.constant 126 : i32
    %37 = tpu.dynamic_rotate %32 by %c126_i32 dim 1 : vector<16x128xf32>, i32 -> vector<16x128xf32>
    %38 = tpu.concatenate %34, %35, %32, %36, %37 in 0 : vector<16x128xf32>, vector<16x128xf32>, vector<16x128xf32>, vector<16x128xf32>, vector<16x128xf32> -> vector<80x128xf32>
    %cst_13 = arith.constant dense<0.000000e+00> : vector<8x128xf32>
    %39 = tpu.matmul %33, %38, %cst_13 {dimension_numbers = #tpu.dot_dimension_numbers<[1], [0], [0], [1], [0, 0, 1, 1], [], []>} : vector<8x80xf32>, vector<80x128xf32>, vector<8x128xf32> -> vector<8x128xf32>
    %40 = vector.broadcast %1 : vector<1x128xf32> to vector<8x128xf32>
    %41 = arith.mulf %39, %40 : vector<8x128xf32>
    %cst_14 = arith.constant dense<0.000000e+00> : vector<8xf32>
    %42 = vector.multi_reduction <add>, %41, %cst_14 [1] : vector<8x128xf32> to vector<8xf32>
    %43 = vector.shape_cast %42 : vector<8xf32> to vector<8x1xf32>
    %44 = arith.mulf %41, %41 : vector<8x128xf32>
    %cst_15 = arith.constant dense<0.000000e+00> : vector<8xf32>
    %45 = vector.multi_reduction <add>, %44, %cst_15 [1] : vector<8x128xf32> to vector<8xf32>
    %46 = vector.shape_cast %45 : vector<8xf32> to vector<8x1xf32>
    %cst_16 = arith.constant 3.125000e-02 : f32
    %47 = vector.broadcast %cst_16 : f32 to vector<8x1xf32>
    %48 = arith.mulf %43, %47 : vector<8x1xf32>
    %cst_17 = arith.constant 3.125000e-02 : f32
    %49 = vector.broadcast %cst_17 : f32 to vector<8x1xf32>
    %50 = arith.mulf %46, %49 : vector<8x1xf32>
    %51 = arith.mulf %48, %48 : vector<8x1xf32>
    %52 = arith.subf %50, %51 : vector<8x1xf32>
    %cst_18 = arith.constant 9.99999974E-6 : f32
    %53 = vector.broadcast %cst_18 : f32 to vector<8x1xf32>
    %54 = arith.addf %52, %53 : vector<8x1xf32>
    %55 = math.rsqrt %54 : vector<8x1xf32>
    %56 = vector.broadcast %48 : vector<8x1xf32> to vector<8x128xf32>
    %57 = arith.subf %39, %56 : vector<8x128xf32>
    %58 = vector.broadcast %55 : vector<8x1xf32> to vector<8x128xf32>
    %59 = arith.mulf %57, %58 : vector<8x128xf32>
    %cst_19 = arith.constant 0.000000e+00 : f32
    %60 = vector.broadcast %cst_19 : f32 to vector<8x128xf32>
    %61 = arith.maximumf %59, %60 : vector<8x128xf32>
    %62 = vector.broadcast %1 : vector<1x128xf32> to vector<8x128xf32>
    %63 = arith.mulf %61, %62 : vector<8x128xf32>
    %64 = tpu.concatenate %32, %63 in 0 : vector<16x128xf32>, vector<8x128xf32> -> vector<24x128xf32>
    %c0_20 = arith.constant 0 : index
    %c0_21 = arith.constant 0 : index
    %65 = vector.load %arg3[%c0_20, %c0_21] : memref<24x128xf32, #tpu.memory_space<vmem>>, vector<24x128xf32>
    tpu.vector_store %arg3[%c0_20, %c0_21], %64 {strides = array<i32>} : memref<24x128xf32, #tpu.memory_space<vmem>>, vector<24x128xf32>,
    %66 = vector.extract_strided_slice %0 {offsets = [16, 0], sizes = [16, 24], strides = [1, 1]} : vector<32x128xf32> to vector<16x24xf32>
    %c1_i32_22 = arith.constant 1 : i32
    %67 = tpu.dynamic_rotate %2 by %c1_i32_22 dim 1 : vector<8x128xf32>, i32 -> vector<8x128xf32>
    %c127_i32_23 = arith.constant 127 : i32
    %68 = tpu.dynamic_rotate %2 by %c127_i32_23 dim 1 : vector<8x128xf32>, i32 -> vector<8x128xf32>
    %69 = tpu.concatenate %67, %2, %68 in 0 : vector<8x128xf32>, vector<8x128xf32>, vector<8x128xf32> -> vector<24x128xf32>
    %cst_24 = arith.constant dense<0.000000e+00> : vector<16x128xf32>
    %70 = tpu.matmul %66, %69, %cst_24 {dimension_numbers = #tpu.dot_dimension_numbers<[1], [0], [0], [1], [0, 0, 1, 1], [], []>} : vector<16x24xf32>, vector<24x128xf32>, vector<16x128xf32> -> vector<16x128xf32>
    %71 = vector.broadcast %1 : vector<1x128xf32> to vector<16x128xf32>
    %72 = arith.mulf %70, %71 : vector<16x128xf32>
    %cst_25 = arith.constant dense<0.000000e+00> : vector<16xf32>
    %73 = vector.multi_reduction <add>, %72, %cst_25 [1] : vector<16x128xf32> to vector<16xf32>
    %74 = vector.shape_cast %73 : vector<16xf32> to vector<16x1xf32>
    %75 = arith.mulf %72, %72 : vector<16x128xf32>
    %cst_26 = arith.constant dense<0.000000e+00> : vector<16xf32>
    %76 = vector.multi_reduction <add>, %75, %cst_26 [1] : vector<16x128xf32> to vector<16xf32>
    %77 = vector.shape_cast %76 : vector<16xf32> to vector<16x1xf32>
    %cst_27 = arith.constant 3.125000e-02 : f32
    %78 = vector.broadcast %cst_27 : f32 to vector<16x1xf32>
    %79 = arith.mulf %74, %78 : vector<16x1xf32>
    %cst_28 = arith.constant 3.125000e-02 : f32
    %80 = vector.broadcast %cst_28 : f32 to vector<16x1xf32>
    %81 = arith.mulf %77, %80 : vector<16x1xf32>
    %82 = arith.mulf %79, %79 : vector<16x1xf32>
    %83 = arith.subf %81, %82 : vector<16x1xf32>
    %cst_29 = arith.constant 9.99999974E-6 : f32
    %84 = vector.broadcast %cst_29 : f32 to vector<16x1xf32>
    %85 = arith.addf %83, %84 : vector<16x1xf32>
    %86 = math.rsqrt %85 : vector<16x1xf32>
    %87 = vector.broadcast %79 : vector<16x1xf32> to vector<16x128xf32>
    %88 = arith.subf %70, %87 : vector<16x128xf32>
    %89 = vector.broadcast %86 : vector<16x1xf32> to vector<16x128xf32>
    %90 = arith.mulf %88, %89 : vector<16x128xf32>
    %cst_30 = arith.constant 0.000000e+00 : f32
    %91 = vector.broadcast %cst_30 : f32 to vector<16x128xf32>
    %92 = arith.maximumf %90, %91 : vector<16x128xf32>
    %93 = vector.broadcast %1 : vector<1x128xf32> to vector<16x128xf32>
    %94 = arith.mulf %92, %93 : vector<16x128xf32>
    %95 = tpu.concatenate %2, %94 in 0 : vector<8x128xf32>, vector<16x128xf32> -> vector<24x128xf32>
    %c0_31 = arith.constant 0 : index
    %c0_32 = arith.constant 0 : index
    %96 = vector.load %arg4[%c0_31, %c0_32] : memref<24x128xf32, #tpu.memory_space<vmem>>, vector<24x128xf32>
    tpu.vector_store %arg4[%c0_31, %c0_32], %95 {strides = array<i32>} : memref<24x128xf32, #tpu.memory_space<vmem>>, vector<24x128xf32>,
    return
  }
}

</mosaic_0001>

<bundles_post_ra>
// kernel: tpu_custom_call.1
= control target key start
LH: loop header
LB: loop body
LE: loop exit
PB: predicated region body
PF: predicated region fallthrough
CT: control target
= control target key end

     0   :  { %10 = vsyncpa [#allocation3], 0  ;;  %s528_s0 = inlined_call_operand.hbm [shape: f32[8,128], index: 0, kind: input, shape index: {}]   ;;  %s529_s1 = inlined_call_operand.hbm [shape: f32[32,128], index: 1, kind: input, shape index: {}]   ;;  %s530_s2 = inlined_call_operand.vmem [shape: f32[1,128], index: 2, kind: input, shape index: {}]   ;;  %s531_s3 = inlined_call_operand.hbm [shape: f32[24,128], index: 3, kind: output, shape index: {0}]   ;;  %s532_s4 = inlined_call_operand.hbm [shape: f32[24,128], index: 4, kind: output, shape index: {1}]  }
   0x1   :  { %11 = vsyncpa [#allocation6], 0 }
   0x2   :  { %12 = vsyncpa [#allocation4], 0 }
   0x3   :  { %13 = vsyncpa [#allocation9], 0  ;;  %s19_s17 = sshll.u32 %s528_s0, 4  ;;  %s431_s18 = smov [#allocation2]   ;;  %s20_s17 = int_to_ptr.hbm [resolvable:$true] %s19_s17 }
   0x4   :  { %s21_s19 = sshll.u32 %s431_s18, 4  ;;  %s29_s22 = sshll.u32 %s529_s1, 4  ;;  %s22_s19 = int_to_ptr.vmem [resolvable:$true] %s21_s19  ;;  %s30_s22 = int_to_ptr.hbm [resolvable:$true] %s29_s22 }
   0x5   :  { %24 = dma.hbm_to_vmem [thread:$0]  %s20_s17, 128, %s22_s19, [#allocation3]  }
   0x6   :  { %s432_s23 = smov [#allocation5]   ;;  %s433_s25 = smov 128  }
   0x7   :  { %s31_s24 = sshll.u32 %s432_s23, 4  ;;  %s434_s26 = smov 8   ;;  %s32_s24 = int_to_ptr.vmem [resolvable:$true] %s31_s24 }
   0x8   :  { %37 = dma.hbm_to_vmem [thread:$0]  %s30_s22, 512, %s32_s24, [#allocation6], %s433_s25, %s433_s25, %s434_s26  }
   0x9   :  { %423 = dma.done.wait [#allocation3], 128  }
   0xa   :  { %424 = vsyncadd [#allocation3], 4294967168 }
   0xb   :  { %425 = dma.done.wait [#allocation6], 512  }
   0xc   :  { %426 = vsyncadd [#allocation6], 4294966784  ;;  %v475_v0 = vld [vmem:[#allocation2] sm:$0xff]  ;;  %s435_s0 = smov 127   ;;  %s436_s1 = smov 1   ;;  %v48_v2 = vld [vmem:[#allocation5] sm:$0xff] }
   0xd   :  { %56 = vrot.lane.b32.xlu0 %v475_v0, %s435_s0  ;;  %171 = vst [vmem:[#allocation7] sm:$0xff] %v475_v0  ;;  %vm58_vm0 = vcmask 195584   ;;  %v496_v4 = vld [vmem:[%s530_s2] ss:$0 sm:$0xff]  ;;  %v50_v8 = vld [vmem:[#allocation5 + $0x10] sm:$0xff]  ;;  %s437_s2 = smov 2  }
   0xe   :  { %253 = vst [vmem:[#allocation8] sm:$0xff] %v475_v0  ;;  %v51_v9 = vld [vmem:[#allocation5 + $0x18] sm:$0xff]  ;;  %s438_s29 = smov 126   ;;  %v49_v42 = vld [vmem:[#allocation5 + $0x8] sm:$0xff]  ;;  %vm122_vm4 = vcmask 654336   ;;  %s439_s30 = smov [#allocation7]  }
   0xf   :  { %s260_s5 = sshll.u32 %s439_s30, 4  ;;  %s262_s8 = sshll.u32 %s531_s3, 4  ;;  %s261_s5 = int_to_ptr.vmem [resolvable:$true] %s260_s5  ;;  %s263_s8 = int_to_ptr.hbm [resolvable:$true] %s262_s8 }
  0x10   :  { %s440_s3 = smov [#allocation8]   ;;  %s275_s12 = sshll.u32 %s532_s4, 4  ;;  %s276_s12 = int_to_ptr.hbm [resolvable:$true] %s275_s12 }
  0x11   :  { %s273_s9 = sshll.u32 %s440_s3, 4  ;;  %s274_s9 = int_to_ptr.vmem [resolvable:$true] %s273_s9 }
  0x15   :  { %54 = vrot.lane.b32.xlu0 %v475_v0, %s436_s1 }
  0x7f   :  { %v483_v1 = vpop.permute.xlu0 %56 }
  0x80   :  { %75 = vmatpush.msra.mxu0 %v483_v1  ;;  %193 = vmatpush.msra.mxu2 %v483_v1 }
  0x82   :  { %76 = vmatpush.msra.mxu0 %v475_v0  ;;  %194 = vmatpush.msra.mxu2 %v475_v0 }
  0x87   :  { %v489_v3 = vpop.permute.xlu0 %54 }
  0x88   :  { %77 = vmatpush.msra.mxu0 %v489_v3  ;;  %195 = vmatpush.msra.mxu2 %v489_v3 }
  0x89   :  { %294 = vmatmul.msk.f32.vlgmr.msra.gmra.mxu0 %vm58_vm0, %v48_v2  ;;  %296 = vmatmul.msk.f32.vlgmr.msra.gmra.mxu2 %vm58_vm0, %v50_v8 }
  0x91   :  { %297 = vmatmul.msk.f32.gmra.mxu2 %vm58_vm0, %v51_v9 }
 0x106   :  { %v79_v5 = vpop.f32.mrf.mxu0 }
 0x107   :  { %v85_v6 = vmul.f32 %v496_v4, %v79_v5 }
 0x109   :  { %86 = vadd.xlane.f32.xlu1 %v85_v6  ;;  %v88_v7 = vmul.f32 %v85_v6, %v85_v6 }
 0x10c   :  { %v503_v29 = vpop.f32.mrf.mxu2 }
 0x10d   :  { %v203_v30 = vmul.f32 %v496_v4, %v503_v29 }
 0x111   :  { %89 = vadd.xlane.f32.xlu1 %v88_v7 }
 0x114   :  { %v200_v31 = vpop.f32.mrf.mxu2 }
 0x115   :  { %v204_v32 = vmul.f32 %v496_v4, %v200_v31 }
 0x117   :  { %v210_v33 = vmul.f32 %v204_v32, %v204_v32 }
 0x17c   :  { %v87_v10 = vpop.xlane.xlu1 %86 }
 0x17d   :  { %v91_v11 = vmul.f32 0.03125, %v87_v10 }
 0x17f   :  { %v93_v13 = vmul.f32 %v91_v11, %v91_v11  ;;  %v106_v23 = vsub.f32 %v79_v5, %v91_v11 }
 0x184   :  { %v90_v12 = vpop.xlane.xlu1 %89 }
 0x185   :  { %v92_v14 = vmul.f32 0.03125, %v90_v12 }
 0x187   :  { %v94_v15 = vsub.f32 %v92_v14, %v93_v13 }
 0x189   :  { %v95_v16 = vadd.f32 1e-05, %v94_v15 }
 0x18b   :  { %319 = vrsqrt.f32 %v95_v16  ;;  %vm102_vm2 = vweird.f32 %v95_v16 }
 0x191   :  { %v320_v17 = vpop.eup %319 }
 0x192   :  { %v97_v18 = vmul.f32 %v320_v17, %v95_v16  ;;  %vm103_vm1 = vweird.f32 %v320_v17 }
 0x193   :  { %vm104_vm3 = vmor %vm102_vm2, %vm103_vm1 }
 0x194   :  { %v98_v19 = vmul.f32 %v320_v17, %v97_v18 }
 0x196   :  { %v99_v20 = vmul.f32 0.5, %v98_v19 }
 0x198   :  { %v100_v21 = vsub.f32 1.5, %v99_v20 }
 0x19a   :  { %v101_v22 = vmul.f32 %v320_v17, %v100_v21 }
 0x19c   :  { %v105_v24 = vsel %vm104_vm3, %v320_v17, %v101_v22 }
 0x19d   :  { %v107_v25 = vmul.f32 %v106_v23, %v105_v24 }
 0x19f   :  { %v108_v26 = vmax.f32 %v107_v25, 0.0 }
 0x1a1   :  { %v109_v27 = vmul.f32 %v496_v4, %v108_v26 }
 0x1a3   :  { %172 = vst [vmem:[#allocation7 + $0x8] sm:$0xff] %v109_v27  ;;  %114 = vrot.lane.b32.xlu0 %v109_v27, %s436_s1  ;;  %v313_v28 = vpack.i.bf16 %v475_v0, %v109_v27 }
 0x1a5   :  { %314 = vrot.lane.b32.xlu1 %v313_v28, %s437_s2  ;;  %309 = vrot.lane.b32.xlu2 %v313_v28, %s438_s29 }
 0x1ad   :  { %116 = vrot.lane.b32.xlu2 %v109_v27, %s435_s0 }
 0x1cd   :  { %205 = vadd.xlane.f32.xlu0 %v203_v30 }
 0x1cf   :  { %207 = vadd.xlane.f32.xlu1 %v204_v32 }
 0x1d5   :  { %213 = vadd.xlane.f32.xlu0 %v210_v33 }
 0x1ff   :  { %v310_v34 = vpop.permute.xlu2 %309 }
 0x200   :  { %v311_v35 = vunpack.i.l.bf16 %v310_v34  ;;  %v312_v36 = vunpack.i.h.bf16 %v310_v34 }
 0x202   :  { %132 = vmatpush.msra.mxu1 %v311_v35 }
 0x204   :  { %133 = vmatpush.msra.mxu1 %v312_v36 }
 0x207   :  { %v117_v37 = vpop.permute.xlu2 %116 }
 0x208   :  { %134 = vmatpush.msra.mxu1 %v117_v37 }
 0x20a   :  { %135 = vmatpush.msra.mxu1 %v483_v1  ;;  %v209_v1 = vmul.f32 %v203_v30, %v203_v30 }
 0x20c   :  { %136 = vmatpush.msra.mxu1 %v109_v27 }
 0x20e   :  { %137 = vmatpush.msra.mxu1 %v475_v0 }
 0x215   :  { %v115_v38 = vpop.permute.xlu0 %114 }
 0x216   :  { %138 = vmatpush.msra.mxu1 %v115_v38 }
 0x217   :  { %v315_v39 = vpop.permute.xlu1 %314 }
 0x218   :  { %139 = vmatpush.msra.mxu1 %v489_v3  ;;  %v316_v40 = vunpack.i.l.bf16 %v315_v39  ;;  %v317_v41 = vunpack.i.h.bf16 %v315_v39 }
 0x21a   :  { %140 = vmatpush.msra.mxu1 %v316_v40 }
 0x21c   :  { %141 = vmatpush.msra.mxu1 %v317_v41 }
 0x21d   :  { %295 = vmatmul.msk.f32.vlgmr.msra.gmra.mxu1 %vm122_vm4, %v49_v42 }
 0x240   :  { %v206_v43 = vpop.xlane.xlu0 %205 }
 0x241   :  { %v215_v10 = vmul.f32 0.03125, %v206_v43 }
 0x242   :  { %v208_v44 = vpop.xlane.xlu1 %207 }
 0x243   :  { %v216_v45 = vmul.f32 0.03125, %v208_v44  ;;  %v219_v12 = vmul.f32 %v215_v10, %v215_v10  ;;  %v245_v34 = vsub.f32 %v503_v29, %v215_v10 }
 0x245   :  { %v220_v47 = vmul.f32 %v216_v45, %v216_v45  ;;  %v246_v56 = vsub.f32 %v200_v31, %v216_v45 }
 0x248   :  { %v214_v46 = vpop.xlane.xlu0 %213 }
 0x249   :  { %v218_v48 = vmul.f32 0.03125, %v214_v46 }
 0x24b   :  { %v222_v49 = vsub.f32 %v218_v48, %v220_v47 }
 0x24d   :  { %v224_v50 = vadd.f32 1e-05, %v222_v49 }
 0x24f   :  { %321 = vrsqrt.f32 %v224_v50  ;;  %vm241_vm5 = vweird.f32 %v224_v50 }
 0x255   :  { %v322_v51 = vpop.eup %321 }
 0x256   :  { %v236_v52 = vmul.f32 %v322_v51, %v224_v50  ;;  %vm242_vm6 = vweird.f32 %v322_v51 }
 0x257   :  { %vm243_vm7 = vmor %vm241_vm5, %vm242_vm6 }
 0x258   :  { %v237_v53 = vmul.f32 %v322_v51, %v236_v52 }
 0x25a   :  { %v238_v54 = vmul.f32 0.5, %v237_v53 }
 0x25c   :  { %v239_v55 = vsub.f32 1.5, %v238_v54 }
 0x25e   :  { %v240_v57 = vmul.f32 %v322_v51, %v239_v55 }
 0x260   :  { %v244_v58 = vsel %vm243_vm7, %v322_v51, %v240_v57 }
 0x261   :  { %v248_v59 = vmul.f32 %v246_v56, %v244_v58 }
 0x263   :  { %v250_v60 = vmax.f32 %v248_v59, 0.0 }
 0x265   :  { %v252_v61 = vmul.f32 %v496_v4, %v250_v60 }
 0x267   :  { %255 = vst [vmem:[#allocation8 + $0x10] sm:$0xff] %v252_v61 }
 0x29a   :  { %v143_v62 = vpop.f32.mrf.mxu1 }
 0x29b   :  { %v146_v63 = vmul.f32 %v496_v4, %v143_v62 }
 0x29d   :  { %147 = vadd.xlane.f32.xlu2 %v146_v63  ;;  %v149_v0 = vmul.f32 %v146_v63, %v146_v63 }
 0x2a5   :  { %150 = vadd.xlane.f32.xlu2 %v149_v0 }
 0x2ad   :  { %211 = vadd.xlane.f32.xlu2 %v209_v1 }
 0x310   :  { %v148_v2 = vpop.xlane.xlu2 %147 }
 0x311   :  { %v152_v3 = vmul.f32 0.03125, %v148_v2 }
 0x313   :  { %v154_v6 = vmul.f32 %v152_v3, %v152_v3  ;;  %v167_v24 = vsub.f32 %v143_v62, %v152_v3 }
 0x318   :  { %v151_v5 = vpop.xlane.xlu2 %150 }
 0x319   :  { %v153_v7 = vmul.f32 0.03125, %v151_v5 }
 0x31b   :  { %v155_v8 = vsub.f32 %v153_v7, %v154_v6 }
 0x31d   :  { %v156_v9 = vadd.f32 1e-05, %v155_v8 }
 0x31f   :  { %323 = vrsqrt.f32 %v156_v9  ;;  %vm163_vm9 = vweird.f32 %v156_v9 }
 0x320   :  { %v212_v11 = vpop.xlane.xlu2 %211 }
 0x321   :  { %v217_v13 = vmul.f32 0.03125, %v212_v11 }
 0x323   :  { %v221_v14 = vsub.f32 %v217_v13, %v219_v12 }
 0x325   :  { %v324_v15 = vpop.eup %323  ;;  %v223_v16 = vadd.f32 1e-05, %v221_v14 }
 0x326   :  { %v158_v17 = vmul.f32 %v324_v15, %v156_v9  ;;  %vm164_vm8 = vweird.f32 %v324_v15 }
 0x327   :  { %325 = vrsqrt.f32 %v223_v16  ;;  %vm165_vm10 = vmor %vm163_vm9, %vm164_vm8  ;;  %vm231_vm12 = vweird.f32 %v223_v16 }
 0x328   :  { %v159_v18 = vmul.f32 %v324_v15, %v158_v17 }
 0x32a   :  { %v160_v19 = vmul.f32 0.5, %v159_v18 }
 0x32c   :  { %v161_v20 = vsub.f32 1.5, %v160_v19 }
 0x32d   :  { %v326_v21 = vpop.eup %325 }
 0x32e   :  { %v162_v22 = vmul.f32 %v324_v15, %v161_v20  ;;  %v226_v23 = vmul.f32 %v326_v21, %v223_v16  ;;  %vm232_vm11 = vweird.f32 %v326_v21 }
 0x32f   :  { %vm233_vm13 = vmor %vm231_vm12, %vm232_vm11 }
 0x330   :  { %v166_v25 = vsel %vm165_vm10, %v324_v15, %v162_v22  ;;  %v227_v26 = vmul.f32 %v326_v21, %v226_v23 }
 0x331   :  { %v168_v27 = vmul.f32 %v167_v24, %v166_v25 }
 0x332   :  { %v228_v28 = vmul.f32 0.5, %v227_v26 }
 0x333   :  { %v169_v30 = vmax.f32 %v168_v27, 0.0 }
 0x334   :  { %v229_v31 = vsub.f32 1.5, %v228_v28 }
 0x335   :  { %v170_v32 = vmul.f32 %v496_v4, %v169_v30 }
 0x336   :  { %v230_v33 = vmul.f32 %v326_v21, %v229_v31 }
 0x337   :  { %173 = vst [vmem:[#allocation7 + $0x10] sm:$0xff] %v170_v32 }
 0x338   :  { %v234_v35 = vsel %vm233_vm13, %v326_v21, %v230_v33  ;;  %268 = dma.vmem_to_hbm [thread:$0]  %s261_s5, 384, %s263_s8, [#allocation4], %s433_s25, %s433_s25, %s434_s26  }
 0x339   :  { %v247_v36 = vmul.f32 %v245_v34, %v234_v35 }
 0x33b   :  { %v249_v37 = vmax.f32 %v247_v36, 0.0 }
 0x33d   :  { %v251_v38 = vmul.f32 %v496_v4, %v249_v37 }
 0x33f   :  { %254 = vst [vmem:[#allocation8 + $0x8] sm:$0xff] %v251_v38 }
 0x340   :  { %281 = dma.vmem_to_hbm [thread:$0]  %s274_s9, 384, %s276_s12, [#allocation9], %s433_s25, %s433_s25, %s434_s26  }
 0x341   :  { %427 = dma.done.wait [#allocation4], 384  }
 0x342   :  { %428 = vsyncadd [#allocation4], 4294966912 }
 0x343   :  { %429 = dma.done.wait [#allocation9], 384  }
 0x344   :  { %430 = vsyncadd [#allocation9], 4294966912 }
 0x345   :  { %290 = vsyncpa [#allocation3], 1 }
 0x346   :  { %291 = vsyncpa [#allocation6], 1 }
 0x347   :  { %292 = vsyncpa [#allocation4], 1 }
 0x348   :  { %293 = vsyncpa [#allocation9], 1 }

</bundles_post_ra>
